<compile_context>
chip_gen: v7x
topology: tpu7x:2x2x1
jax: 0.10.0
libtpu: 0.0.40
codegen_flags: <defaults>
</compile_context>

<pallas_src>
import functools
import math

import jax
import jax.numpy as jnp
from jax import lax
from jax.experimental import pallas as pl
from jax.experimental.pallas import tpu as pltpu

_DEFAULT_TILE_BYTES = 1 << 20   # per input, per pipeline buffer
_NUM_SPLITS = 2                 # leading parallel axis (v7x has 2 TensorCores)


def _mask_rows(x, fill, tm, tiles_per_split, rows_total):
    """Replace rows past `rows_total` with `fill` so their terms vanish."""
    g = pl.program_id(0) * tiles_per_split + pl.program_id(1)   # unclamped tile id
    rows = g * tm + lax.broadcasted_iota(jnp.int32, x.shape, 0)
    return jnp.where(rows < rows_total, x, fill)


def _kl_sum_kernel(x_ref, o_ref, *, tm, tiles_per_split, rows_total, need_mask):
    """Accumulates sum(x * log x) over row tiles into a per-split partial."""
    i = pl.program_id(1)

    @pl.when(i == 0)
    def _():
        o_ref[...] = jnp.zeros_like(o_ref)

    x = x_ref[...].astype(jnp.float32)       # cast after the DMA, in VMEM
    if need_mask:
        x = _mask_rows(x, 1.0, tm, tiles_per_split, rows_total)  # 1*log(1) == 0
    o_ref[...] += jnp.sum(x * jnp.log(x))    # scalar broadcast into the slab


def _kl_sum_kernel_tgt(x_ref, t_ref, o_ref, *, tm, tiles_per_split, rows_total,
                       need_mask):
    """Accumulates sum(x * (log x - log t)) over row tiles."""
    i = pl.program_id(1)

    @pl.when(i == 0)
    def _():
        o_ref[...] = jnp.zeros_like(o_ref)

    x = x_ref[...].astype(jnp.float32)
    t = t_ref[...].astype(jnp.float32)
    if need_mask:
        x = _mask_rows(x, 1.0, tm, tiles_per_split, rows_total)
        t = _mask_rows(t, 1.0, tm, tiles_per_split, rows_total)
    o_ref[...] += jnp.sum(x * (jnp.log(x) - jnp.log(t)))


def kldiv(pred, target=None, norm_scalar=1.0, *, tile_bytes=_DEFAULT_TILE_BYTES):
    """Pallas implementation of KLDiv.forward. Returns a scalar f32."""
    B, C, T, H, W = pred.shape
    R = B * T
    D = C * H * W                      # matches torch's contiguous view(B, T, -1)

    inputs = [pred.reshape(R, D)]      # NO dtype cast here — cast in-kernel
    if target is not None:
        inputs.append(target.reshape(R, D))

    # ---- row-tile size: layout-legal & sized for double-buffered VMEM ----
    elem_bytes = jnp.dtype(pred.dtype).itemsize
    tm = tile_bytes // max(D * elem_bytes, 1)
    tm = max(32, min(1024, (tm // 32) * 32))   # 32 rows: legal for f32/bf16/i8
    if tm >= R:
        tm = R                          # single full-extent tile is always legal

    total_tiles = -(-R // tm)
    n_splits = min(_NUM_SPLITS, total_tiles)
    tiles_per_split = -(-total_tiles // n_splits)
    need_mask = (n_splits * tiles_per_split * tm) != R

    def in_map(c, i):
        # Clamp so partially/fully out-of-range tiles re-read a valid block;
        # those rows are masked out inside the kernel.
        return (jnp.minimum(c * tiles_per_split + i, total_tiles - 1), 0)

    static = dict(tm=tm, tiles_per_split=tiles_per_split, rows_total=R,
                  need_mask=need_mask)
    kernel = (functools.partial(_kl_sum_kernel, **static) if target is None
              else functools.partial(_kl_sum_kernel_tgt, **static))

    # Per-split partials live in an (8, 128) slab so the output block is
    # layout-legal; every element of a slab holds the same scalar value.
    partial_slabs = pl.pallas_call(
        kernel,
        out_shape=jax.ShapeDtypeStruct((n_splits, 8, 128), jnp.float32),
        grid=(n_splits, tiles_per_split),
        in_specs=[pl.BlockSpec((tm, D), in_map) for _ in inputs],
        out_specs=pl.BlockSpec((1, 8, 128), lambda c, i: (c, 0, 0)),
        compiler_params=pltpu.CompilerParams(
            dimension_semantics=("parallel", "arbitrary"),
            vmem_limit_bytes=32 * 1024 * 1024),
    )(*inputs)

    total = jnp.sum(partial_slabs[:, 0, 0])          # one scalar per split

    inv_norm = 1.0 / (R * math.log(norm_scalar * H * W))
    if target is None:
        log_q = math.log(norm_scalar / float(H * W))
        total = total - jnp.float32(R * log_q)
    return (total * jnp.float32(inv_norm)).astype(jnp.float32)


def _kldiv_ref(pred, target=None, norm_scalar=1.0):
    """Plain-JAX reference mirroring the PyTorch code line-for-line."""
    B, _, T, H, W = pred.shape
    atten = pred.reshape(B, T, -1).astype(jnp.float32)
    log_atten = jnp.log(atten)
    if target is None:
        log_q = jnp.log(norm_scalar / float(H * W))
        kl = jnp.sum(atten * log_atten, axis=-1) - log_q
    else:
        log_q = jnp.log(target.reshape(B, T, -1).astype(jnp.float32))
        kl = jnp.sum(atten * log_atten, axis=-1) - jnp.sum(atten * log_q, axis=-1)
    norm = T * jnp.log(jnp.float32(norm_scalar) * H * W)
    kl = jnp.sum(kl, axis=-1) / norm
    return jnp.mean(kl)


if __name__ == "__main__":
    NORM_SCALAR = 1.0   # buffer value from __init__
    key = jax.random.PRNGKey(0)
    k1, k2, k3, k4 = jax.random.split(key, 4)

    def make_maps(k, B, C, T, H, W, dtype=jnp.float32):
        logits = jax.random.normal(k, (B, C, T, H * W), dtype=jnp.float32)
        maps = jax.nn.softmax(logits, axis=-1).reshape(B, C, T, H, W)
        return maps.astype(dtype)

    # --- small shape: single-tile path ---
    B, C, T, H, W = 2, 1, 8, 16, 16
    pred = make_maps(k1, B, C, T, H, W)
    target = make_maps(k2, B, C, T, H, W)

    out = jax.block_until_ready(kldiv(pred, None, NORM_SCALAR))
    ref = _kldiv_ref(pred, None, NORM_SCALAR)
    assert jnp.allclose(out, ref, rtol=1e-5, atol=1e-6), (out, ref)

    out = jax.block_until_ready(kldiv(pred, target, NORM_SCALAR))
    ref = _kldiv_ref(pred, target, NORM_SCALAR)
    assert jnp.allclose(out, ref, rtol=1e-5, atol=1e-6), (out, ref)

    # --- forced multi-tile path (exercises 2-way split, masking, clamping) ---
    B2, C2, T2, H2, W2 = 2, 1, 40, 16, 16      # R = 80 rows, tile = 32 rows
    pred2 = make_maps(k3, B2, C2, T2, H2, W2)
    target2 = make_maps(k4, B2, C2, T2, H2, W2)
    small_tile = 32 * (C2 * H2 * W2) * 4       # force a 32-row tile

    out = jax.block_until_ready(kldiv(pred2, None, NORM_SCALAR, tile_bytes=small_tile))
    ref = _kldiv_ref(pred2, None, NORM_SCALAR)
    assert jnp.allclose(out, ref, rtol=1e-5, atol=1e-6), (out, ref)

    out = jax.block_until_ready(kldiv(pred2, target2, NORM_SCALAR, tile_bytes=small_tile))
    ref = _kldiv_ref(pred2, target2, NORM_SCALAR)
    assert jnp.allclose(out, ref, rtol=1e-5, atol=1e-6), (out, ref)

    # --- bf16 input path (cast happens inside the kernel) ---
    pred_bf16 = pred.astype(jnp.bfloat16)
    out = jax.block_until_ready(kldiv(pred_bf16, None, NORM_SCALAR))
    ref = _kldiv_ref(pred_bf16, None, NORM_SCALAR)
    assert jnp.allclose(out, ref, rtol=1e-3, atol=1e-4), (out, ref)

    print("KERNEL_OK")
</pallas_src>

<mosaic_0001>
module attributes {stable_mosaic.version = 11 : i64} {
  func.func @_kl_sum_kernel(%arg0: i32, %arg1: i32, %arg2: memref<16x256xf32, #tpu.memory_space<vmem>>, %arg3: memref<1x8x128xf32, #tpu.memory_space<vmem>>) attributes {dimension_semantics = [#tpu.dimension_semantics<parallel>, #tpu.dimension_semantics<arbitrary>], iteration_bounds = array<i64: 1, 1>, scalar_prefetch = 0 : i64, scratch_operands = 0 : i64, tpu.core_type = #tpu.core_type<tc>, window_params = [{transform_indices = @transform_0, window_bounds = array<i64: 16, 256>}, {transform_indices = @transform_1, window_bounds = array<i64: 1, 8, 128>}]} {
    %c0_i32 = arith.constant 0 : i32
    %0 = arith.cmpi eq, %arg1, %c0_i32 : i32
    %1 = arith.extui %0 : i1 to i32
    %c0_i32_0 = arith.constant 0 : i32
    %2 = arith.cmpi ne, %1, %c0_i32_0 : i32
    scf.if %2 {
      %cst_8 = arith.constant 0.000000e+00 : f32
      %14 = vector.broadcast %cst_8 : f32 to vector<1x8x128xf32>
      %c0_9 = arith.constant 0 : index
      %c0_10 = arith.constant 0 : index
      %c0_11 = arith.constant 0 : index
      %15 = vector.load %arg3[%c0_9, %c0_10, %c0_11] : memref<1x8x128xf32, #tpu.memory_space<vmem>>, vector<1x8x128xf32>
      tpu.vector_store %arg3[%c0_9, %c0_10, %c0_11], %14 {strides = array<i32>} : memref<1x8x128xf32, #tpu.memory_space<vmem>>, vector<1x8x128xf32>,
    } else {
    }
    %c0 = arith.constant 0 : index
    %c0_1 = arith.constant 0 : index
    %3 = vector.load %arg2[%c0, %c0_1] : memref<16x256xf32, #tpu.memory_space<vmem>>, vector<16x256xf32>
    %c0_2 = arith.constant 0 : index
    %c0_3 = arith.constant 0 : index
    %c0_4 = arith.constant 0 : index
    %4 = vector.load %arg3[%c0_2, %c0_3, %c0_4] : memref<1x8x128xf32, #tpu.memory_space<vmem>>, vector<1x8x128xf32>
    %5 = math.log %3 : vector<16x256xf32>
    %6 = arith.mulf %3, %5 : vector<16x256xf32>
    %7 = vector.shape_cast %6 : vector<16x256xf32> to vector<1x16x256xf32>
    %cst = arith.constant dense<0.000000e+00> : vector<1xf32>
    %8 = vector.multi_reduction <add>, %7, %cst [1, 2] : vector<1x16x256xf32> to vector<1xf32>
    %9 = vector.shape_cast %8 : vector<1xf32> to vector<1x1x1xf32>
    %10 = vector.extract %9[0, 0, 0] : f32 from vector<1x1x1xf32>
    %11 = vector.broadcast %10 : f32 to vector<1x8x128xf32>
    %12 = arith.addf %4, %11 : vector<1x8x128xf32>
    %c0_5 = arith.constant 0 : index
    %c0_6 = arith.constant 0 : index
    %c0_7 = arith.constant 0 : index
    %13 = vector.load %arg3[%c0_5, %c0_6, %c0_7] : memref<1x8x128xf32, #tpu.memory_space<vmem>>, vector<1x8x128xf32>
    tpu.vector_store %arg3[%c0_5, %c0_6, %c0_7], %12 {strides = array<i32>} : memref<1x8x128xf32, #tpu.memory_space<vmem>>, vector<1x8x128xf32>,
    return
  }
  func.func @transform_0(%arg0: i32, %arg1: i32) -> (i32, i32) {
    %c1_i32 = arith.constant 1 : i32
    %0 = arith.muli %arg0, %c1_i32 : i32
    %1 = arith.addi %0, %arg1 : i32
    %c0_i32 = arith.constant 0 : i32
    %2 = arith.minsi %1, %c0_i32 : i32
    %c0_i32_0 = arith.constant 0 : i32
    %c0_i32_1 = arith.constant 0 : i32
    return %2, %c0_i32_0 : i32, i32
  }
  func.func @transform_1(%arg0: i32, %arg1: i32) -> (i32, i32, i32) {
    %c0_i32 = arith.constant 0 : i32
    %c0_i32_0 = arith.constant 0 : i32
    %c0_i32_1 = arith.constant 0 : i32
    return %arg0, %c0_i32, %c0_i32_0 : i32, i32, i32
  }
}

</mosaic_0001>

<bundles_post_ra>
// kernel: tpu_custom_call.1
= control target key start
LH: loop header
LB: loop body
LE: loop exit
PB: predicated region body
PF: predicated region fallthrough
CT: control target
= control target key end

     0   :  { %6 = vsyncpa [#allocation3], 0  ;;  %s189_s0 = inlined_call_operand.hbm [shape: f32[16,256], index: 0, kind: input, shape index: {}]   ;;  %s190_s1 = inlined_call_operand.hbm [shape: f32[1,8,128], index: 1, kind: output, shape index: {}]  }
   0x1   :  { %7 = vsyncpa [#allocation4], 0  ;;  %s151_s6 = smov [#allocation2]   ;;  %s103_s10 = scalar_lea.hbm %s189_s0, 512 }
   0x2   :  { %s20_s7 = sshll.u32 %s151_s6, 4  ;;  %p104_p0 = scmp.ne.s32.totalorder %s189_s0, %s103_s10  ;;  %s21_s7 = int_to_ptr.vmem [resolvable:$true] %s20_s7 }
   0x3   :  { %p107_p1 = scmp.lt.u32.totalorder %s103_s10, %s189_s0 }
   0x5   :  { %p109_p2 = pnand %p107_p1, %p104_p0 }
   0x7   :  { %112 = shalt.err (!%p109_p2)
}
   0x8   :  { %s113_s15 = scalar_lea.vmem %s21_s7, 512  ;;  %p118_p4 = scmp.lt.s32.totalorder %s21_s7, %s21_s7 }
   0x9   :  { %p114_p3 = scmp.ne.s32.totalorder %s21_s7, %s113_s15  ;;  %p119_p5 = scmp.lt.s32.totalorder %s113_s15, %s113_s15 }
   0xb   :  { %p120_p6 = por %p119_p5, %p118_p4 }
   0xd   :  { %p121_p7 = pnand %p120_p6, %p114_p3 }
   0xf   :  { %124 = shalt.err (!%p121_p7)
}
  0x10   :  { %s152_s16 = smov 256   ;;  %s153_s17 = smov 16  }
  0x11   :  { %26 = dma.hbm_to_vmem [thread:$0]  %s189_s0, 512, %s21_s7, [#allocation3], %s152_s16, %s152_s16, %s153_s17  }
  0x12   :  { %147 = dma.done.wait [#allocation3], 512  }
  0x13   :  { %148 = vsyncadd [#allocation3], 4294966784  ;;  %v39_v0 = vld [vmem:[#allocation2] sm:$0xff]  ;;  %v40_v1 = vld [vmem:[#allocation2 + $0x8] sm:$0xff]  ;;  %s154_s0 = smov [#allocation5]  }
  0x14   :  { %v41_v2 = vld [vmem:[#allocation2 + $0x10] sm:$0xff]  ;;  %v42_v3 = vld [vmem:[#allocation2 + $0x18] sm:$0xff]  ;;  %95 = vlog2.f32 %v39_v0  ;;  %s77_s20 = sshll.u32 %s154_s0, 4  ;;  %s78_s20 = int_to_ptr.vmem [resolvable:$true] %s77_s20 }
  0x15   :  { %97 = vlog2.f32 %v40_v1  ;;  %s125_s22 = scalar_lea.vmem %s78_s20, 128  ;;  %p130_p9 = scmp.lt.s32.totalorder %s78_s20, %s78_s20 }
  0x16   :  { %99 = vlog2.f32 %v41_v2  ;;  %p126_p8 = scmp.ne.s32.totalorder %s78_s20, %s125_s22  ;;  %p131_p10 = scmp.lt.s32.totalorder %s125_s22, %s125_s22 }
  0x17   :  { %101 = vlog2.f32 %v42_v3 }
  0x18   :  { %p132_p11 = por %p131_p10, %p130_p9 }
  0x1a   :  { %p133_p12 = pnand %p132_p11, %p126_p8 }
  0x1e   :  { %v96_v4 = vpop.eup %95 }
  0x1f   :  { %v98_v5 = vpop.eup %97  ;;  %v45_v6 = vmul.f32 0.6931472, %v96_v4 }
  0x20   :  { %v100_v7 = vpop.eup %99  ;;  %v47_v8 = vmul.f32 0.6931472, %v98_v5 }
  0x21   :  { %v102_v9 = vpop.eup %101  ;;  %v49_v10 = vmul.f32 0.6931472, %v100_v7  ;;  %v52_v11 = vmul.f32 %v45_v6, %v39_v0 }
  0x22   :  { %v51_v12 = vmul.f32 0.6931472, %v102_v9  ;;  %v53_v13 = vmul.f32 %v47_v8, %v40_v1 }
  0x23   :  { %v54_v14 = vmul.f32 %v49_v10, %v41_v2 }
  0x24   :  { %v55_v15 = vmul.f32 %v51_v12, %v42_v3  ;;  %v56_v16 = vadd.f32 %v53_v13, %v52_v11 }
  0x26   :  { %v57_v17 = vadd.f32 %v56_v16, %v54_v14 }
  0x28   :  { %v58_v18 = vadd.f32 %v57_v17, %v55_v15 }
  0x2a   :  { %59 = vadd.xlane.f32.xlu0 %v58_v18 }
  0xb7   :  { %v60_v19 = vpop.xlane.xlu0 %59 }
  0xb8   :  { %v61_v20 = vrot.slane %v60_v19, 4 }
  0xba   :  { %v62_v21 = vadd.f32 %v61_v20, %v60_v19 }
  0xbc   :  { %v63_v22 = vrot.slane %v62_v21, 2 }
  0xbe   :  { %v64_v23 = vadd.f32 %v63_v22, %v62_v21 }
  0xc0   :  { %v65_v24 = vrot.slane %v64_v23, 1 }
  0xc2   :  { %v66_v25 = vadd.f32 %v65_v24, %v64_v23 }
  0xc4   :  { %88 = vpush %v66_v25 }
  0xf5   :  { %s89_s21 = spop %88 }
  0xf6   :  { %v68_v26 = vstv %s89_s21 }
  0xf7   :  { %70 = vst [vmem:[#allocation5] sm:$0xff] %v68_v26 }
  0xf8   :  { %136 = shalt.err (!%p133_p12)
}
  0xf9   :  { %s137_s25 = scalar_lea.hbm %s190_s1, 128 }
  0xfa   :  { %p138_p13 = scmp.ne.s32.totalorder %s190_s1, %s137_s25  ;;  %p141_p0 = scmp.lt.u32.totalorder %s137_s25, %s190_s1 }
  0xfc   :  { %p143_p1 = pnand %p141_p0, %p138_p13 }
  0xfe   :  { %146 = shalt.err (!%p143_p1)
}
  0xff   :  { %80 = dma.vmem_to_hbm [thread:$0]  %s78_s20, 128, %s190_s1, [#allocation4]  }
 0x100   :  { %149 = dma.done.wait [#allocation4], 128  }
 0x101   :  { %150 = vsyncadd [#allocation4], 4294967168 }
 0x102   :  { %84 = vsyncpa [#allocation3], 1 }
 0x103   :  { %85 = vsyncpa [#allocation4], 1 }

</bundles_post_ra>
